<compile_context>
chip_gen: v5e
topology: v5e:2x2
jax: 0.10.0
libtpu: 0.0.40
codegen_flags: <defaults>
</compile_context>

<pallas_src>
import numpy as np
import jax
import jax.numpy as jnp
from jax.experimental import pallas as pl
from jax.experimental.pallas import tpu as pltpu


def _make_roi_align_kernel(PH, PW, SH, SW, H, W, C):
    """SH, SW: static upper bounds of the per-ROI sampling grid."""

    def kernel(bidx_ref, params_ref, feat_ref, out_ref):
        del bidx_ref                      # consumed by the BlockSpec index_map
        r = pl.program_id(0)
        start_w = params_ref[0, r]
        start_h = params_ref[1, r]
        bin_w = params_ref[2, r]
        bin_h = params_ref[3, r]
        grid_w = params_ref[4, r]         # float-valued int (may be 0)
        grid_h = params_ref[5, r]
        step_w = params_ref[6, r]         # bin_w / max(grid_w, 1)
        step_h = params_ref[7, r]         # bin_h / max(grid_h, 1)
        inv_count = params_ref[8, r]      # 1 / max(grid_w * grid_h, 1)

        # ---- separable row weights WY: (PH, H) ------------------------------
        ph_f = jax.lax.broadcasted_iota(jnp.int32, (PH, 1), 0).astype(jnp.float32)
        h_idx = jax.lax.broadcasted_iota(jnp.int32, (PH, H), 1)
        wy = jnp.zeros((PH, H), jnp.float32)
        for iy in range(SH):              # static, short; per-iter work is tiny
            y = start_h + ph_f * bin_h + (iy + 0.5) * step_h          # (PH, 1)
            m = jnp.where((y >= -1.0) & (y <= float(H)) & (float(iy) < grid_h),
                          1.0, 0.0)
            yc = jnp.maximum(y, 0.0)
            y_low0 = jnp.floor(yc).astype(jnp.int32)
            clamp = y_low0 >= (H - 1)
            y_low = jnp.where(clamp, H - 1, y_low0)
            y_high = jnp.where(clamp, H - 1, y_low0 + 1)
            yv = jnp.where(clamp, jnp.float32(H - 1), yc)
            ly = yv - y_low.astype(jnp.float32)
            hy = 1.0 - ly
            wy = (wy + jnp.where(h_idx == y_low, hy * m, 0.0)
                     + jnp.where(h_idx == y_high, ly * m, 0.0))

        # ---- separable column weights WX^T: (W, PW) --------------------------
        pw_f = jax.lax.broadcasted_iota(jnp.int32, (1, PW), 1).astype(jnp.float32)
        w_idx = jax.lax.broadcasted_iota(jnp.int32, (W, PW), 0)
        wx = jnp.zeros((W, PW), jnp.float32)
        for ix in range(SW):
            x = start_w + pw_f * bin_w + (ix + 0.5) * step_w          # (1, PW)
            m = jnp.where((x >= -1.0) & (x <= float(W)) & (float(ix) < grid_w),
                          1.0, 0.0)
            xc = jnp.maximum(x, 0.0)
            x_low0 = jnp.floor(xc).astype(jnp.int32)
            clamp = x_low0 >= (W - 1)
            x_low = jnp.where(clamp, W - 1, x_low0)
            x_high = jnp.where(clamp, W - 1, x_low0 + 1)
            xv = jnp.where(clamp, jnp.float32(W - 1), xc)
            lx = xv - x_low.astype(jnp.float32)
            hx = 1.0 - lx
            wx = (wx + jnp.where(w_idx == x_low, hx * m, 0.0)
                     + jnp.where(w_idx == x_high, lx * m, 0.0))

        # ---- two C-batched matmuls:  out = inv_count * WY @ F @ WX^T ---------
        feat = feat_ref[0]                                    # (C, H, W) f32
        wy_b = jnp.broadcast_to(wy[None], (C, PH, H))
        t1 = jax.lax.dot_general(                             # (C, PH, W)
            wy_b, feat, (((2,), (1,)), ((0,), (0,))),
            preferred_element_type=jnp.float32)
        wx_b = jnp.broadcast_to(wx[None], (C, W, PW))
        acc = jax.lax.dot_general(                            # (C, PH, PW)
            t1, wx_b, (((2,), (1,)), ((0,), (0,))),
            preferred_element_type=jnp.float32)
        out_ref[0] = (acc * inv_count).astype(out_ref.dtype)

    return kernel


def roi_align_deterministic(x, rois, output_size, spatial_scale=1.0,
                            sampling_ratio=0, pool_mode='avg', aligned=True,
                            max_sampling_ratio=8):
    """Forward of mmcv RoIAlignDeterministic ('avg' mode) via a Pallas kernel."""
    assert pool_mode == 'avg', "only 'avg' pool mode is implemented"
    # TODO(synk): pool_mode='max' (argmax_y/argmax_x side outputs) and the
    # backward pass are not implemented.
    if isinstance(output_size, (tuple, list)):
        PH, PW = int(output_size[0]), int(output_size[1])
    else:
        PH = PW = int(output_size)
    N, C, H, W = x.shape
    R = rois.shape[0]

    x = x.astype(jnp.float32)
    rois = rois.astype(jnp.float32)
    batch_idx = rois[:, 0].astype(jnp.int32)

    # ---- per-ROI scalar parameter setup (plain-JAX glue, read from SMEM) ----
    offset = 0.5 if aligned else 0.0
    roi_start_w = rois[:, 1] * spatial_scale - offset
    roi_start_h = rois[:, 2] * spatial_scale - offset
    roi_end_w = rois[:, 3] * spatial_scale - offset
    roi_end_h = rois[:, 4] * spatial_scale - offset
    roi_w = roi_end_w - roi_start_w
    roi_h = roi_end_h - roi_start_h
    if not aligned:
        roi_w = jnp.maximum(roi_w, 1.0)
        roi_h = jnp.maximum(roi_h, 1.0)
    bin_w = roi_w / PW
    bin_h = roi_h / PH
    if sampling_ratio > 0:
        SH = SW = int(sampling_ratio)
        grid_w = jnp.full((R,), float(sampling_ratio), jnp.float32)
        grid_h = jnp.full((R,), float(sampling_ratio), jnp.float32)
    else:
        grid_w = jnp.ceil(roi_w / PW)
        grid_h = jnp.ceil(roi_h / PH)
        try:   # static sampling-grid bound (requires concrete rois)
            SH = max(1, int(np.asarray(jax.device_get(grid_h)).max())) if R else 1
            SW = max(1, int(np.asarray(jax.device_get(grid_w)).max())) if R else 1
        except Exception:
            # TODO(synk): under jit the data-dependent bound is unavailable;
            # clamp the sampling grid to a static cap (deviates from the mmcv
            # op only for ROIs spanning more than `cap` bins per output cell).
            SH = SW = int(max_sampling_ratio)
            grid_h = jnp.minimum(grid_h, float(SH))
            grid_w = jnp.minimum(grid_w, float(SW))
    gw_div = jnp.maximum(grid_w, 1.0)
    gh_div = jnp.maximum(grid_h, 1.0)
    step_w = bin_w / gw_div
    step_h = bin_h / gh_div
    inv_count = 1.0 / jnp.maximum(grid_w * grid_h, 1.0)
    params = jnp.stack([roi_start_w, roi_start_h, bin_w, bin_h,
                        grid_w, grid_h, step_w, step_h, inv_count],
                       axis=0).astype(jnp.float32)            # (9, R)

    # ---- sort ROIs by batch index so the feature slab stays resident --------
    order = jnp.argsort(batch_idx)
    inv_order = jnp.argsort(order)
    batch_idx_s = batch_idx[order]
    params_s = params[:, order]

    kernel = _make_roi_align_kernel(PH, PW, SH, SW, H, W, C)

    grid_spec = pltpu.PrefetchScalarGridSpec(
        num_scalar_prefetch=1,                   # sorted batch indices -> SMEM
        grid=(R,),
        in_specs=[
            pl.BlockSpec(memory_space=pltpu.MemorySpace.SMEM),            # params
            pl.BlockSpec((1, C, H, W), lambda r, bidx: (bidx[r], 0, 0, 0)),  # feats
        ],
        out_specs=pl.BlockSpec((1, C, PH, PW), lambda r, bidx: (r, 0, 0, 0)),
    )

    out_sorted = pl.pallas_call(
        kernel,
        out_shape=jax.ShapeDtypeStruct((R, C, PH, PW), jnp.float32),
        grid_spec=grid_spec,
        compiler_params=pltpu.CompilerParams(
            dimension_semantics=("parallel",),   # each ROI writes its own block
            vmem_limit_bytes=64 * 1024 * 1024),
    )(batch_idx_s, params_s, x)

    return out_sorted[inv_order]                 # un-permute back to input order


class RoIAlignDeterministic:
    """Mirror of mmcv.ops.RoIAlignDeterministic (forward, 'avg' mode)."""

    def __init__(self, output_size, spatial_scale=1.0, sampling_ratio=0,
                 pool_mode='avg', aligned=True):
        self.output_size = (tuple(output_size)
                            if isinstance(output_size, (tuple, list))
                            else (int(output_size), int(output_size)))
        self.spatial_scale = float(spatial_scale)
        self.sampling_ratio = int(sampling_ratio)
        self.pool_mode = pool_mode
        self.aligned = aligned

    def __call__(self, x, rois):
        return roi_align_deterministic(x, rois, self.output_size,
                                       self.spatial_scale, self.sampling_ratio,
                                       self.pool_mode, self.aligned)


# ------------------------- numpy reference (for check) -------------------------
def _bilinear_np(img_hwc, y, x, H, W):
    if y < -1.0 or y > H or x < -1.0 or x > W:
        return np.zeros(img_hwc.shape[-1], np.float64)
    y = max(y, 0.0)
    x = max(x, 0.0)
    y_low = int(np.floor(y))
    x_low = int(np.floor(x))
    if y_low >= H - 1:
        y_high = y_low = H - 1
        y = float(y_low)
    else:
        y_high = y_low + 1
    if x_low >= W - 1:
        x_high = x_low = W - 1
        x = float(x_low)
    else:
        x_high = x_low + 1
    ly, lx = y - y_low, x - x_low
    hy, hx = 1.0 - ly, 1.0 - lx
    return (hy * hx * img_hwc[y_low, x_low] + hy * lx * img_hwc[y_low, x_high]
            + ly * hx * img_hwc[y_high, x_low] + ly * lx * img_hwc[y_high, x_high])


def roi_align_reference(x, rois, output_size, spatial_scale, sampling_ratio, aligned):
    x = np.asarray(x, np.float64)
    rois = np.asarray(rois, np.float64)
    N, C, H, W = x.shape
    R = rois.shape[0]
    PH, PW = output_size
    out = np.zeros((R, C, PH, PW), np.float64)
    off = 0.5 if aligned else 0.0
    feat = np.transpose(x, (0, 2, 3, 1))
    for r in range(R):
        b = int(rois[r, 0])
        sw = rois[r, 1] * spatial_scale - off
        sh = rois[r, 2] * spatial_scale - off
        ew = rois[r, 3] * spatial_scale - off
        eh = rois[r, 4] * spatial_scale - off
        rw, rh = ew - sw, eh - sh
        if not aligned:
            rw, rh = max(rw, 1.0), max(rh, 1.0)
        bw, bh = rw / PW, rh / PH
        gh = sampling_ratio if sampling_ratio > 0 else int(np.ceil(rh / PH))
        gw = sampling_ratio if sampling_ratio > 0 else int(np.ceil(rw / PW))
        count = max(gh * gw, 1)
        for ph in range(PH):
            for pw_ in range(PW):
                acc = np.zeros(C, np.float64)
                for iy in range(gh):
                    yy = sh + ph * bh + (iy + 0.5) * bh / gh
                    for ix in range(gw):
                        xx = sw + pw_ * bw + (ix + 0.5) * bw / gw
                        acc += _bilinear_np(feat[b], yy, xx, H, W)
                out[r, :, ph, pw_] = acc / count
    return out


if __name__ == "__main__":
    key = jax.random.PRNGKey(0)
    N, C, H, W = 2, 8, 16, 16
    R = 6
    output_size = (4, 4)
    spatial_scale = 0.5
    sampling_ratio = 0          # dense sampling, module default
    aligned = True

    k1, k2, k3, k4 = jax.random.split(key, 4)
    x = jax.random.normal(k1, (N, C, H, W), dtype=jnp.float32)
    batch_idx = jax.random.randint(k2, (R, 1), 0, N).astype(jnp.float32)
    xy1 = jax.random.uniform(k3, (R, 2), minval=0.0, maxval=20.0)
    wh = jax.random.uniform(k4, (R, 2), minval=2.0, maxval=14.0)
    rois = jnp.concatenate([batch_idx, xy1, xy1 + wh], axis=1)   # (R, 5)

    layer = RoIAlignDeterministic(output_size, spatial_scale=spatial_scale,
                                  sampling_ratio=sampling_ratio,
                                  pool_mode='avg', aligned=aligned)
    out = layer(x, rois)
    out = jax.block_until_ready(out)
    assert out.shape == (R, C, output_size[0], output_size[1])

    ref = roi_align_reference(x, rois, output_size, spatial_scale,
                              sampling_ratio, aligned)
    np.testing.assert_allclose(np.asarray(out, np.float64), ref,
                               rtol=1e-3, atol=1e-3)
    print("KERNEL_OK")
</pallas_src>

<mosaic_0001>
module attributes {stable_mosaic.version = 11 : i64} {
  func.func @kernel(%arg0: i32, %arg1: memref<6xi32, #tpu.memory_space<smem>>, %arg2: memref<9x6xf32, #tpu.memory_space<smem>>, %arg3: memref<1x8x16x16xf32, #tpu.memory_space<vmem>>, %arg4: memref<1x8x4x4xf32, #tpu.memory_space<vmem>>) attributes {dimension_semantics = [#tpu.dimension_semantics<parallel>], iteration_bounds = array<i64: 6>, scalar_prefetch = 1 : i64, scratch_operands = 0 : i64, tpu.core_type = #tpu.core_type<tc>, window_params = [{transform_indices = @transform_0, window_bounds = array<i64: 9, 6>}, {transform_indices = @transform_1, window_bounds = array<i64: 1, 8, 16, 16>}, {transform_indices = @transform_2, window_bounds = array<i64: 1, 8, 4, 4>}]} {
    %c0 = arith.constant 0 : index
    %0 = arith.index_cast %arg0 : i32 to index
    %1 = memref.load %arg2[%c0, %0] : memref<9x6xf32, #tpu.memory_space<smem>>
    %c1 = arith.constant 1 : index
    %2 = arith.index_cast %arg0 : i32 to index
    %3 = memref.load %arg2[%c1, %2] : memref<9x6xf32, #tpu.memory_space<smem>>
    %c2 = arith.constant 2 : index
    %4 = arith.index_cast %arg0 : i32 to index
    %5 = memref.load %arg2[%c2, %4] : memref<9x6xf32, #tpu.memory_space<smem>>
    %c3 = arith.constant 3 : index
    %6 = arith.index_cast %arg0 : i32 to index
    %7 = memref.load %arg2[%c3, %6] : memref<9x6xf32, #tpu.memory_space<smem>>
    %c4 = arith.constant 4 : index
    %8 = arith.index_cast %arg0 : i32 to index
    %9 = memref.load %arg2[%c4, %8] : memref<9x6xf32, #tpu.memory_space<smem>>
    %c5 = arith.constant 5 : index
    %10 = arith.index_cast %arg0 : i32 to index
    %11 = memref.load %arg2[%c5, %10] : memref<9x6xf32, #tpu.memory_space<smem>>
    %c6 = arith.constant 6 : index
    %12 = arith.index_cast %arg0 : i32 to index
    %13 = memref.load %arg2[%c6, %12] : memref<9x6xf32, #tpu.memory_space<smem>>
    %c7 = arith.constant 7 : index
    %14 = arith.index_cast %arg0 : i32 to index
    %15 = memref.load %arg2[%c7, %14] : memref<9x6xf32, #tpu.memory_space<smem>>
    %c8 = arith.constant 8 : index
    %16 = arith.index_cast %arg0 : i32 to index
    %17 = memref.load %arg2[%c8, %16] : memref<9x6xf32, #tpu.memory_space<smem>>
    %18 = tpu.iota {dimensions = array<i32: 0>} : vector<4x1xi32>
    %19 = arith.sitofp %18 : vector<4x1xi32> to vector<4x1xf32>
    %20 = tpu.iota {dimensions = array<i32: 1>} : vector<4x16xi32>
    %cst = arith.constant 0.000000e+00 : f32
    %21 = vector.broadcast %cst : f32 to vector<4x16xf32>
    %22 = vector.broadcast %7 : f32 to vector<4x1xf32>
    %23 = arith.mulf %19, %22 : vector<4x1xf32>
    %24 = vector.broadcast %3 : f32 to vector<4x1xf32>
    %25 = arith.addf %24, %23 : vector<4x1xf32>
    %cst_0 = arith.constant 5.000000e-01 : f32
    %26 = arith.mulf %cst_0, %15 : f32
    %27 = vector.broadcast %26 : f32 to vector<4x1xf32>
    %28 = arith.addf %25, %27 : vector<4x1xf32>
    %cst_1 = arith.constant -1.000000e+00 : f32
    %29 = vector.broadcast %cst_1 : f32 to vector<4x1xf32>
    %30 = arith.cmpf oge, %28, %29 : vector<4x1xf32>
    %cst_2 = arith.constant 1.600000e+01 : f32
    %31 = vector.broadcast %cst_2 : f32 to vector<4x1xf32>
    %32 = arith.cmpf ole, %28, %31 : vector<4x1xf32>
    %33 = arith.andi %30, %32 : vector<4x1xi1>
    %cst_3 = arith.constant 0.000000e+00 : f32
    %34 = arith.cmpf ogt, %11, %cst_3 : f32
    %35 = vector.broadcast %34 : i1 to vector<4x1xi1>
    %36 = arith.andi %33, %35 : vector<4x1xi1>
    %cst_4 = arith.constant 1.000000e+00 : f32
    %cst_5 = arith.constant 0.000000e+00 : f32
    %37 = vector.broadcast %cst_4 : f32 to vector<4x1xf32>
    %38 = vector.broadcast %cst_5 : f32 to vector<4x1xf32>
    %39 = arith.select %36, %37, %38 : vector<4x1xi1>, vector<4x1xf32>
    %cst_6 = arith.constant 0.000000e+00 : f32
    %40 = vector.broadcast %cst_6 : f32 to vector<4x1xf32>
    %41 = arith.maximumf %28, %40 : vector<4x1xf32>
    %42 = math.floor %41 : vector<4x1xf32>
    %43 = arith.fptosi %42 : vector<4x1xf32> to vector<4x1xi32>
    %c15_i32 = arith.constant 15 : i32
    %44 = vector.broadcast %c15_i32 : i32 to vector<4x1xi32>
    %45 = arith.cmpi sge, %43, %44 : vector<4x1xi32>
    %c15_i32_7 = arith.constant 15 : i32
    %46 = vector.broadcast %c15_i32_7 : i32 to vector<4x1xi32>
    %47 = arith.select %45, %46, %43 : vector<4x1xi1>, vector<4x1xi32>
    %c1_i32 = arith.constant 1 : i32
    %48 = vector.broadcast %c1_i32 : i32 to vector<4x1xi32>
    %49 = arith.addi %43, %48 : vector<4x1xi32>
    %c15_i32_8 = arith.constant 15 : i32
    %50 = vector.broadcast %c15_i32_8 : i32 to vector<4x1xi32>
    %51 = arith.select %45, %50, %49 : vector<4x1xi1>, vector<4x1xi32>
    %cst_9 = arith.constant 1.500000e+01 : f32
    %52 = vector.broadcast %cst_9 : f32 to vector<4x1xf32>
    %53 = arith.select %45, %52, %41 : vector<4x1xi1>, vector<4x1xf32>
    %54 = arith.sitofp %47 : vector<4x1xi32> to vector<4x1xf32>
    %55 = arith.subf %53, %54 : vector<4x1xf32>
    %cst_10 = arith.constant 1.000000e+00 : f32
    %56 = vector.broadcast %cst_10 : f32 to vector<4x1xf32>
    %57 = arith.subf %56, %55 : vector<4x1xf32>
    %58 = vector.broadcast %47 : vector<4x1xi32> to vector<4x16xi32>
    %59 = arith.cmpi eq, %20, %58 : vector<4x16xi32>
    %60 = arith.mulf %57, %39 : vector<4x1xf32>
    %cst_11 = arith.constant 0.000000e+00 : f32
    %61 = vector.shape_cast %60 : vector<4x1xf32> to vector<4x1xf32>
    %62 = vector.broadcast %61 : vector<4x1xf32> to vector<4x16xf32>
    %63 = vector.broadcast %cst_11 : f32 to vector<4x16xf32>
    %64 = arith.select %59, %62, %63 : vector<4x16xi1>, vector<4x16xf32>
    %65 = arith.addf %21, %64 : vector<4x16xf32>
    %66 = vector.broadcast %51 : vector<4x1xi32> to vector<4x16xi32>
    %67 = arith.cmpi eq, %20, %66 : vector<4x16xi32>
    %68 = arith.mulf %55, %39 : vector<4x1xf32>
    %cst_12 = arith.constant 0.000000e+00 : f32
    %69 = vector.shape_cast %68 : vector<4x1xf32> to vector<4x1xf32>
    %70 = vector.broadcast %69 : vector<4x1xf32> to vector<4x16xf32>
    %71 = vector.broadcast %cst_12 : f32 to vector<4x16xf32>
    %72 = arith.select %67, %70, %71 : vector<4x16xi1>, vector<4x16xf32>
    %73 = arith.addf %65, %72 : vector<4x16xf32>
    %74 = vector.broadcast %7 : f32 to vector<4x1xf32>
    %75 = arith.mulf %19, %74 : vector<4x1xf32>
    %76 = vector.broadcast %3 : f32 to vector<4x1xf32>
    %77 = arith.addf %76, %75 : vector<4x1xf32>
    %cst_13 = arith.constant 1.500000e+00 : f32
    %78 = arith.mulf %cst_13, %15 : f32
    %79 = vector.broadcast %78 : f32 to vector<4x1xf32>
    %80 = arith.addf %77, %79 : vector<4x1xf32>
    %cst_14 = arith.constant -1.000000e+00 : f32
    %81 = vector.broadcast %cst_14 : f32 to vector<4x1xf32>
    %82 = arith.cmpf oge, %80, %81 : vector<4x1xf32>
    %cst_15 = arith.constant 1.600000e+01 : f32
    %83 = vector.broadcast %cst_15 : f32 to vector<4x1xf32>
    %84 = arith.cmpf ole, %80, %83 : vector<4x1xf32>
    %85 = arith.andi %82, %84 : vector<4x1xi1>
    %cst_16 = arith.constant 1.000000e+00 : f32
    %86 = arith.cmpf ogt, %11, %cst_16 : f32
    %87 = vector.broadcast %86 : i1 to vector<4x1xi1>
    %88 = arith.andi %85, %87 : vector<4x1xi1>
    %cst_17 = arith.constant 1.000000e+00 : f32
    %cst_18 = arith.constant 0.000000e+00 : f32
    %89 = vector.broadcast %cst_17 : f32 to vector<4x1xf32>
    %90 = vector.broadcast %cst_18 : f32 to vector<4x1xf32>
    %91 = arith.select %88, %89, %90 : vector<4x1xi1>, vector<4x1xf32>
    %cst_19 = arith.constant 0.000000e+00 : f32
    %92 = vector.broadcast %cst_19 : f32 to vector<4x1xf32>
    %93 = arith.maximumf %80, %92 : vector<4x1xf32>
    %94 = math.floor %93 : vector<4x1xf32>
    %95 = arith.fptosi %94 : vector<4x1xf32> to vector<4x1xi32>
    %c15_i32_20 = arith.constant 15 : i32
    %96 = vector.broadcast %c15_i32_20 : i32 to vector<4x1xi32>
    %97 = arith.cmpi sge, %95, %96 : vector<4x1xi32>
    %c15_i32_21 = arith.constant 15 : i32
    %98 = vector.broadcast %c15_i32_21 : i32 to vector<4x1xi32>
    %99 = arith.select %97, %98, %95 : vector<4x1xi1>, vector<4x1xi32>
    %c1_i32_22 = arith.constant 1 : i32
    %100 = vector.broadcast %c1_i32_22 : i32 to vector<4x1xi32>
    %101 = arith.addi %95, %100 : vector<4x1xi32>
    %c15_i32_23 = arith.constant 15 : i32
    %102 = vector.broadcast %c15_i32_23 : i32 to vector<4x1xi32>
    %103 = arith.select %97, %102, %101 : vector<4x1xi1>, vector<4x1xi32>
    %cst_24 = arith.constant 1.500000e+01 : f32
    %104 = vector.broadcast %cst_24 : f32 to vector<4x1xf32>
    %105 = arith.select %97, %104, %93 : vector<4x1xi1>, vector<4x1xf32>
    %106 = arith.sitofp %99 : vector<4x1xi32> to vector<4x1xf32>
    %107 = arith.subf %105, %106 : vector<4x1xf32>
    %cst_25 = arith.constant 1.000000e+00 : f32
    %108 = vector.broadcast %cst_25 : f32 to vector<4x1xf32>
    %109 = arith.subf %108, %107 : vector<4x1xf32>
    %110 = vector.broadcast %99 : vector<4x1xi32> to vector<4x16xi32>
    %111 = arith.cmpi eq, %20, %110 : vector<4x16xi32>
    %112 = arith.mulf %109, %91 : vector<4x1xf32>
    %cst_26 = arith.constant 0.000000e+00 : f32
    %113 = vector.shape_cast %112 : vector<4x1xf32> to vector<4x1xf32>
    %114 = vector.broadcast %113 : vector<4x1xf32> to vector<4x16xf32>
    %115 = vector.broadcast %cst_26 : f32 to vector<4x16xf32>
    %116 = arith.select %111, %114, %115 : vector<4x16xi1>, vector<4x16xf32>
    %117 = arith.addf %73, %116 : vector<4x16xf32>
    %118 = vector.broadcast %103 : vector<4x1xi32> to vector<4x16xi32>
    %119 = arith.cmpi eq, %20, %118 : vector<4x16xi32>
    %120 = arith.mulf %107, %91 : vector<4x1xf32>
    %cst_27 = arith.constant 0.000000e+00 : f32
    %121 = vector.shape_cast %120 : vector<4x1xf32> to vector<4x1xf32>
    %122 = vector.broadcast %121 : vector<4x1xf32> to vector<4x16xf32>
    %123 = vector.broadcast %cst_27 : f32 to vector<4x16xf32>
    %124 = arith.select %119, %122, %123 : vector<4x16xi1>, vector<4x16xf32>
    %125 = arith.addf %117, %124 : vector<4x16xf32>
    %126 = tpu.iota {dimensions = array<i32: 1>} : vector<1x4xi32>
    %127 = arith.sitofp %126 : vector<1x4xi32> to vector<1x4xf32>
    %128 = tpu.iota {dimensions = array<i32: 0>} : vector<16x4xi32>
    %cst_28 = arith.constant 0.000000e+00 : f32
    %129 = vector.broadcast %cst_28 : f32 to vector<16x4xf32>
    %130 = vector.broadcast %5 : f32 to vector<1x4xf32>
    %131 = arith.mulf %127, %130 : vector<1x4xf32>
    %132 = vector.broadcast %1 : f32 to vector<1x4xf32>
    %133 = arith.addf %132, %131 : vector<1x4xf32>
    %cst_29 = arith.constant 5.000000e-01 : f32
    %134 = arith.mulf %cst_29, %13 : f32
    %135 = vector.broadcast %134 : f32 to vector<1x4xf32>
    %136 = arith.addf %133, %135 : vector<1x4xf32>
    %cst_30 = arith.constant -1.000000e+00 : f32
    %137 = vector.broadcast %cst_30 : f32 to vector<1x4xf32>
    %138 = arith.cmpf oge, %136, %137 : vector<1x4xf32>
    %cst_31 = arith.constant 1.600000e+01 : f32
    %139 = vector.broadcast %cst_31 : f32 to vector<1x4xf32>
    %140 = arith.cmpf ole, %136, %139 : vector<1x4xf32>
    %141 = arith.andi %138, %140 : vector<1x4xi1>
    %cst_32 = arith.constant 0.000000e+00 : f32
    %142 = arith.cmpf ogt, %9, %cst_32 : f32
    %143 = vector.broadcast %142 : i1 to vector<1x4xi1>
    %144 = arith.andi %141, %143 : vector<1x4xi1>
    %cst_33 = arith.constant 1.000000e+00 : f32
    %cst_34 = arith.constant 0.000000e+00 : f32
    %145 = vector.broadcast %cst_33 : f32 to vector<1x4xf32>
    %146 = vector.broadcast %cst_34 : f32 to vector<1x4xf32>
    %147 = arith.select %144, %145, %146 : vector<1x4xi1>, vector<1x4xf32>
    %cst_35 = arith.constant 0.000000e+00 : f32
    %148 = vector.broadcast %cst_35 : f32 to vector<1x4xf32>
    %149 = arith.maximumf %136, %148 : vector<1x4xf32>
    %150 = math.floor %149 : vector<1x4xf32>
    %151 = arith.fptosi %150 : vector<1x4xf32> to vector<1x4xi32>
    %c15_i32_36 = arith.constant 15 : i32
    %152 = vector.broadcast %c15_i32_36 : i32 to vector<1x4xi32>
    %153 = arith.cmpi sge, %151, %152 : vector<1x4xi32>
    %c15_i32_37 = arith.constant 15 : i32
    %154 = vector.broadcast %c15_i32_37 : i32 to vector<1x4xi32>
    %155 = arith.select %153, %154, %151 : vector<1x4xi1>, vector<1x4xi32>
    %c1_i32_38 = arith.constant 1 : i32
    %156 = vector.broadcast %c1_i32_38 : i32 to vector<1x4xi32>
    %157 = arith.addi %151, %156 : vector<1x4xi32>
    %c15_i32_39 = arith.constant 15 : i32
    %158 = vector.broadcast %c15_i32_39 : i32 to vector<1x4xi32>
    %159 = arith.select %153, %158, %157 : vector<1x4xi1>, vector<1x4xi32>
    %cst_40 = arith.constant 1.500000e+01 : f32
    %160 = vector.broadcast %cst_40 : f32 to vector<1x4xf32>
    %161 = arith.select %153, %160, %149 : vector<1x4xi1>, vector<1x4xf32>
    %162 = arith.sitofp %155 : vector<1x4xi32> to vector<1x4xf32>
    %163 = arith.subf %161, %162 : vector<1x4xf32>
    %cst_41 = arith.constant 1.000000e+00 : f32
    %164 = vector.broadcast %cst_41 : f32 to vector<1x4xf32>
    %165 = arith.subf %164, %163 : vector<1x4xf32>
    %166 = vector.broadcast %155 : vector<1x4xi32> to vector<16x4xi32>
    %167 = arith.cmpi eq, %128, %166 : vector<16x4xi32>
    %168 = arith.mulf %165, %147 : vector<1x4xf32>
    %cst_42 = arith.constant 0.000000e+00 : f32
    %169 = vector.shape_cast %168 : vector<1x4xf32> to vector<1x4xf32>
    %170 = vector.broadcast %169 : vector<1x4xf32> to vector<16x4xf32>
    %171 = vector.broadcast %cst_42 : f32 to vector<16x4xf32>
    %172 = arith.select %167, %170, %171 : vector<16x4xi1>, vector<16x4xf32>
    %173 = arith.addf %129, %172 : vector<16x4xf32>
    %174 = vector.broadcast %159 : vector<1x4xi32> to vector<16x4xi32>
    %175 = arith.cmpi eq, %128, %174 : vector<16x4xi32>
    %176 = arith.mulf %163, %147 : vector<1x4xf32>
    %cst_43 = arith.constant 0.000000e+00 : f32
    %177 = vector.shape_cast %176 : vector<1x4xf32> to vector<1x4xf32>
    %178 = vector.broadcast %177 : vector<1x4xf32> to vector<16x4xf32>
    %179 = vector.broadcast %cst_43 : f32 to vector<16x4xf32>
    %180 = arith.select %175, %178, %179 : vector<16x4xi1>, vector<16x4xf32>
    %181 = arith.addf %173, %180 : vector<16x4xf32>
    %182 = vector.broadcast %5 : f32 to vector<1x4xf32>
    %183 = arith.mulf %127, %182 : vector<1x4xf32>
    %184 = vector.broadcast %1 : f32 to vector<1x4xf32>
    %185 = arith.addf %184, %183 : vector<1x4xf32>
    %cst_44 = arith.constant 1.500000e+00 : f32
    %186 = arith.mulf %cst_44, %13 : f32
    %187 = vector.broadcast %186 : f32 to vector<1x4xf32>
    %188 = arith.addf %185, %187 : vector<1x4xf32>
    %cst_45 = arith.constant -1.000000e+00 : f32
    %189 = vector.broadcast %cst_45 : f32 to vector<1x4xf32>
    %190 = arith.cmpf oge, %188, %189 : vector<1x4xf32>
    %cst_46 = arith.constant 1.600000e+01 : f32
    %191 = vector.broadcast %cst_46 : f32 to vector<1x4xf32>
    %192 = arith.cmpf ole, %188, %191 : vector<1x4xf32>
    %193 = arith.andi %190, %192 : vector<1x4xi1>
    %cst_47 = arith.constant 1.000000e+00 : f32
    %194 = arith.cmpf ogt, %9, %cst_47 : f32
    %195 = vector.broadcast %194 : i1 to vector<1x4xi1>
    %196 = arith.andi %193, %195 : vector<1x4xi1>
    %cst_48 = arith.constant 1.000000e+00 : f32
    %cst_49 = arith.constant 0.000000e+00 : f32
    %197 = vector.broadcast %cst_48 : f32 to vector<1x4xf32>
    %198 = vector.broadcast %cst_49 : f32 to vector<1x4xf32>
    %199 = arith.select %196, %197, %198 : vector<1x4xi1>, vector<1x4xf32>
    %cst_50 = arith.constant 0.000000e+00 : f32
    %200 = vector.broadcast %cst_50 : f32 to vector<1x4xf32>
    %201 = arith.maximumf %188, %200 : vector<1x4xf32>
    %202 = math.floor %201 : vector<1x4xf32>
    %203 = arith.fptosi %202 : vector<1x4xf32> to vector<1x4xi32>
    %c15_i32_51 = arith.constant 15 : i32
    %204 = vector.broadcast %c15_i32_51 : i32 to vector<1x4xi32>
    %205 = arith.cmpi sge, %203, %204 : vector<1x4xi32>
    %c15_i32_52 = arith.constant 15 : i32
    %206 = vector.broadcast %c15_i32_52 : i32 to vector<1x4xi32>
    %207 = arith.select %205, %206, %203 : vector<1x4xi1>, vector<1x4xi32>
    %c1_i32_53 = arith.constant 1 : i32
    %208 = vector.broadcast %c1_i32_53 : i32 to vector<1x4xi32>
    %209 = arith.addi %203, %208 : vector<1x4xi32>
    %c15_i32_54 = arith.constant 15 : i32
    %210 = vector.broadcast %c15_i32_54 : i32 to vector<1x4xi32>
    %211 = arith.select %205, %210, %209 : vector<1x4xi1>, vector<1x4xi32>
    %cst_55 = arith.constant 1.500000e+01 : f32
    %212 = vector.broadcast %cst_55 : f32 to vector<1x4xf32>
    %213 = arith.select %205, %212, %201 : vector<1x4xi1>, vector<1x4xf32>
    %214 = arith.sitofp %207 : vector<1x4xi32> to vector<1x4xf32>
    %215 = arith.subf %213, %214 : vector<1x4xf32>
    %cst_56 = arith.constant 1.000000e+00 : f32
    %216 = vector.broadcast %cst_56 : f32 to vector<1x4xf32>
    %217 = arith.subf %216, %215 : vector<1x4xf32>
    %218 = vector.broadcast %207 : vector<1x4xi32> to vector<16x4xi32>
    %219 = arith.cmpi eq, %128, %218 : vector<16x4xi32>
    %220 = arith.mulf %217, %199 : vector<1x4xf32>
    %cst_57 = arith.constant 0.000000e+00 : f32
    %221 = vector.shape_cast %220 : vector<1x4xf32> to vector<1x4xf32>
    %222 = vector.broadcast %221 : vector<1x4xf32> to vector<16x4xf32>
    %223 = vector.broadcast %cst_57 : f32 to vector<16x4xf32>
    %224 = arith.select %219, %222, %223 : vector<16x4xi1>, vector<16x4xf32>
    %225 = arith.addf %181, %224 : vector<16x4xf32>
    %226 = vector.broadcast %211 : vector<1x4xi32> to vector<16x4xi32>
    %227 = arith.cmpi eq, %128, %226 : vector<16x4xi32>
    %228 = arith.mulf %215, %199 : vector<1x4xf32>
    %cst_58 = arith.constant 0.000000e+00 : f32
    %229 = vector.shape_cast %228 : vector<1x4xf32> to vector<1x4xf32>
    %230 = vector.broadcast %229 : vector<1x4xf32> to vector<16x4xf32>
    %231 = vector.broadcast %cst_58 : f32 to vector<16x4xf32>
    %232 = arith.select %227, %230, %231 : vector<16x4xi1>, vector<16x4xf32>
    %233 = arith.addf %225, %232 : vector<16x4xf32>
    %c0_59 = arith.constant 0 : index
    %c0_60 = arith.constant 0 : index
    %c0_61 = arith.constant 0 : index
    %c0_62 = arith.constant 0 : index
    %234 = vector.load %arg3[%c0_59, %c0_60, %c0_61, %c0_62] : memref<1x8x16x16xf32, #tpu.memory_space<vmem>>, vector<1x8x16x16xf32>
    %235 = vector.shape_cast %234 : vector<1x8x16x16xf32> to vector<8x16x16xf32>
    %236 = vector.shape_cast %125 : vector<4x16xf32> to vector<1x4x16xf32>
    %237 = vector.shape_cast %236 : vector<1x4x16xf32> to vector<1x4x16xf32>
    %238 = vector.broadcast %237 : vector<1x4x16xf32> to vector<8x4x16xf32>
    %cst_63 = arith.constant dense<0.000000e+00> : vector<8x4x16xf32>
    %239 = tpu.matmul %238, %235, %cst_63 {dimension_numbers = #tpu.dot_dimension_numbers<[2], [1], [1], [2], [0, 0, 0, 1, 1, 2], [0], [0]>} : vector<8x4x16xf32>, vector<8x16x16xf32>, vector<8x4x16xf32> -> vector<8x4x16xf32>
    %240 = vector.shape_cast %233 : vector<16x4xf32> to vector<1x16x4xf32>
    %241 = vector.shape_cast %240 : vector<1x16x4xf32> to vector<1x16x4xf32>
    %242 = vector.broadcast %241 : vector<1x16x4xf32> to vector<8x16x4xf32>
    %cst_64 = arith.constant dense<0.000000e+00> : vector<8x4x4xf32>
    %243 = tpu.matmul %239, %242, %cst_64 {dimension_numbers = #tpu.dot_dimension_numbers<[2], [1], [1], [2], [0, 0, 0, 1, 1, 2], [0], [0]>} : vector<8x4x16xf32>, vector<8x16x4xf32>, vector<8x4x4xf32> -> vector<8x4x4xf32>
    %244 = vector.broadcast %17 : f32 to vector<8x4x4xf32>
    %245 = arith.mulf %243, %244 : vector<8x4x4xf32>
    %c0_65 = arith.constant 0 : index
    %c0_66 = arith.constant 0 : index
    %c0_67 = arith.constant 0 : index
    %c0_68 = arith.constant 0 : index
    %246 = vector.load %arg4[%c0_65, %c0_66, %c0_67, %c0_68] : memref<1x8x4x4xf32, #tpu.memory_space<vmem>>, vector<1x8x4x4xf32>
    %247 = vector.shape_cast %246 : vector<1x8x4x4xf32> to vector<8x4x4xf32>
    %248 = vector.shape_cast %245 : vector<8x4x4xf32> to vector<1x8x4x4xf32>
    tpu.vector_store %arg4[%c0_65, %c0_66, %c0_67, %c0_68], %248 {strides = array<i32>} : memref<1x8x4x4xf32, #tpu.memory_space<vmem>>, vector<1x8x4x4xf32>,
    return
  }
  func.func @transform_0(%arg0: i32, %arg1: memref<6xi32, #tpu.memory_space<smem>>) -> (i32, i32) {
    %c0_i32 = arith.constant 0 : i32
    %c0_i32_0 = arith.constant 0 : i32
    %c0_i32_1 = arith.constant 0 : i32
    return %c0_i32, %c0_i32_0 : i32, i32
  }
  func.func @transform_1(%arg0: i32, %arg1: memref<6xi32, #tpu.memory_space<smem>>) -> (i32, i32, i32, i32) {
    %0 = arith.index_cast %arg0 : i32 to index
    %1 = memref.load %arg1[%0] : memref<6xi32, #tpu.memory_space<smem>>
    %c0_i32 = arith.constant 0 : i32
    %c0_i32_0 = arith.constant 0 : i32
    %c0_i32_1 = arith.constant 0 : i32
    %c0_i32_2 = arith.constant 0 : i32
    return %1, %c0_i32, %c0_i32_0, %c0_i32_1 : i32, i32, i32, i32
  }
  func.func @transform_2(%arg0: i32, %arg1: memref<6xi32, #tpu.memory_space<smem>>) -> (i32, i32, i32, i32) {
    %c0_i32 = arith.constant 0 : i32
    %c0_i32_0 = arith.constant 0 : i32
    %c0_i32_1 = arith.constant 0 : i32
    %c0_i32_2 = arith.constant 0 : i32
    return %arg0, %c0_i32, %c0_i32_0, %c0_i32_1 : i32, i32, i32, i32
  }
}

</mosaic_0001>

<bundles_post_ra>
// kernel: tpu_custom_call.1
= control target key start
LH: loop header
LB: loop body
LE: loop exit
PB: predicated region body
PF: predicated region fallthrough
CT: control target
= control target key end

     0   :  { %s1065_s15 = smov [#allocation3]   ;;  %s1397_s0 = inlined_call_operand.vmem [shape: s32[6], index: 0, kind: input, shape index: {}]   ;;  %s1398_s1 = inlined_call_operand.vmem [shape: f32[9,6], index: 1, kind: input, shape index: {}]   ;;  %s1399_s2 = inlined_call_operand.hbm [shape: f32[2,8,16,16], index: 2, kind: input, shape index: {}]   ;;  %s1400_s3 = inlined_call_operand.vmem [shape: f32[6,8,4,4], index: 3, kind: output, shape index: {}]  }
   0x1   :  { %s9_s14 = sshll.u32 %s1397_s0, 4  ;;  %s10_s14 = int_to_ptr.vmem [resolvable:$true] %s9_s14 }
   0x2   :  { %12 = dma.vmem_to_smem %s10_s14, 16, %s1065_s15, [#allocation2] }
   0x3   :  { %1039 = dma.done.wait [#allocation2], 16 }
   0x4   :  { %1040 = vsyncadd [#allocation2], 4294967280 }
   0x5   :  { %15 = sfence }
   0x6   :  { %16 = vsyncpa [#allocation6], 0 }
   0x7   :  { %17 = vsyncpa [#allocation5], 0 }
   0x8   :  { %19 = vsyncpa [#allocation5 + $0x1], 0  ;;  %s1093_s16 = smov 0   ;;  %s1095_s17 = smov 0  }
   0x9   :  { %s1097_s18 = smov 0   ;;  %s1099_s19 = smov 0  }
   0xa LB: > { %s1112_s0 = sadd.s32 4294967295, %s1063_s19   ;;  %p68_p0 = scmp.ne.s32.totalorder %s1055_s17, %s1051_s16  ;;  %s1063_s19 = sphi %s1099_s19, %s1423_s19   ;;  %s1059_s18 = sphi %s1097_s18, %s1422_s18   ;;  %s1055_s17 = sphi %s1095_s17, %s1421_s17   ;;  %s1051_s16 = sphi %s1093_s16, %s1420_s16  }
   0xb   : > { %p69_p1 = scmp.eq.s32.totalorder %s1112_s0, 0  ;;  %p845_p2 = scmp.ge.s32.totalorder %s1063_s19, 1 }
   0xc   : > { %p105_p3 = scmp.lt.s32.totalorder %s1063_s19, 7  ;;  %s116_s23 = sshll.u32 %s1398_s1, 4  ;;  %s117_s23 = int_to_ptr.vmem [resolvable:$true] %s116_s23 }
   0xd   : > { %p1120_p4 = por %p69_p1, %p68_p0  ;;  %s1136_s25 = sadd.s32 1, %s1063_s19  }
   0xe   : > { %p1127_p5 = pnand %p845_p2, %p105_p3  ;;  %s50_s26 = sld [smem:[#allocation3 + %s1063_s19]] }
   0xf   : > { %s51_s27 = sld [smem:[#allocation3 + %s1136_s25]]  ;;  %s1066_s28 = smov [#allocation4]  }
  0x10   : > { %p916_p6 = pneg %p1127_p5  ;;  %s1067_s29 = smov 128  }
  0x11   : > { %s1068_s30 = smov 8   ;;  %p62_p8 = scmp.ne.s32.totalorder %s1059_s18, %s1055_s17 }
  0x12   : > { %p917_p7 = pnand %p916_p6, %p69_p1  ;;  %p63_p9 = scmp.eq.s32.totalorder %s1063_s19, 0 }
  0x13   : > { %s130_s4 = sand.u32 1, %s1059_s18   ;;  %s55_s5 = sadd.s32 1, %s1059_s18 }
  0x14   : > { %919 = dma.vmem_to_smem (!%p917_p7), %s117_s23, 256, %s1066_s28, [#allocation6], %s1067_s29, %s1067_s29, %s1068_s30  }
  0x15   : > { %p64_p10 = por %p63_p9, %p62_p8  ;;  %s52_s6 = ssub.s32 %s50_s26, %s51_s27 }
  0x16   : > { %p927_p11 = scmp.lt.s32.totalorder %s1063_s19, 6  ;;  %p53_p12 = scmp.eq.s32.totalorder %s52_s6, 0 }
  0x17   : > { %s848_s7 = sshll.u32 %s130_s4, 7  ;;  %s1425_s19 = smov (!%p64_p10, %s1063_s19), 0 }
  0x18   : > { %s910_s8 = scalar_select %p64_p10, [#allocation3], [#allocation8] }
  0x19   : > { %s1150_s9 = scalar_select %p53_p12, %s1059_s18, %s55_s5  }
  0x1a   : > { %s1427_s8 = smov (!%p927_p11, %s910_s8), [#allocation9]  ;;  %s1429_s19 = smov (!%p927_p11, %s1425_s19), 0 }
  0x1b   : > { %p1153_p13 = pnand %p927_p11, %p64_p10  ;;  %s135_s11 = sld [smem:[%s1427_s8 + %s1429_s19]] }
  0x1c   : > { %s134_s12 = scalar_lea.vmem [#allocation7], %s848_s7  ;;  %s131_s23 = scalar_lea.sflag [#allocation5], %s130_s4 }
  0x1d   : > { %s143_s13 = sshll.u32 %s134_s12, 4  ;;  %p997_p2 = pneg %p1153_p13  ;;  %s144_s13 = int_to_ptr.vmem [resolvable:$true] %s143_s13 }
  0x1e   : > { %s1000_s5 = scalar_lea.hbm %s1399_s2, 256 }
  0x21   : > { %s882_s14 = sshll.u32 %s135_s11, 7 }
  0x22   : > { %s140_s21 = scalar_lea.hbm %s1399_s2, %s882_s14 }
  0x23   : > { %s141_s22 = sshll.u32 %s140_s21, 4  ;;  %s142_s22 = int_to_ptr.hbm [resolvable:$true] %s141_s22 }
  0x24   : > { %s993_s26 = sshra.s32 %s142_s22, 4  ;;  %s994_s26 = int_to_ptr.hbm [resolvable:$true] %s993_s26 }
  0x25   : > { %s995_s27 = scalar_lea.hbm %s994_s26, 128  ;;  %p1001_p7 = scmp.lt.s32.totalorder %s994_s26, %s1399_s2 }
  0x26   : > { %p996_p0 = scmp.ne.s32.totalorder %s994_s26, %s995_s27  ;;  %p1002_p8 = scmp.lt.s32.totalorder %s1000_s5, %s995_s27 }
  0x28   : > { %p998_p3 = pnand %p997_p2, %p996_p0  ;;  %p1003_p9 = por %p1002_p8, %p1001_p7 }
  0x2a   : > { %p999_p6 = pneg %p998_p3 }
  0x2c   : > { %p1004_p10 = pnand %p1003_p9, %p999_p6 }
  0x2e   : > { %1007 = shalt.err (!%p1004_p10)
}
  0x2f   : > { %925 = dma.hbm_to_vmem [thread:$0]  (!%p1153_p13), %s142_s22, 2048, %s144_s13, %s131_s23, %s1067_s29, %s1067_s29, %s1068_s30  }
  0x30   : > { %155 = sbr.rel (%p1127_p5) target bundleno = 378 (0x17a), region = 28 }
  0x35   : > { %1042 = dma.done.wait (%p69_p1), [#allocation6], 256  }
  0x36   : > { %1044 = vsyncadd (%p69_p1), [#allocation6], 4294967040  ;;  %s162_s4 = sand.u32 1, %s1055_s17  }
  0x37   : > { %s853_s8 = sshll.u32 %s162_s4, 7  ;;  %s163_s11 = scalar_lea.sflag [#allocation5], %s162_s4 }
  0x38   : > { %s1180_s12 = scalar_lea.vmem [#allocation7], %s853_s8 }
  0x39   : > { %1046 = dma.done.wait (%p1120_p4), %s163_s11, 2048  }
  0x3a   : > { %1048 = vsyncadd (%p1120_p4), %s163_s11, 4294965248 }
  0x3b   : > { %172 = sfence }
  0x3c   : > { %v388_v0 = vld [vmem:[%s1180_s12 + $0x28] sm:$0xff]  ;;  %v390_v1 = vld [vmem:[%s1180_s12 + $0x38] sm:$0xff]  ;;  %v387_v2 = vld [vmem:[%s1180_s12 + $0x20] sm:$0xff]  ;;  %s196_s24 = sshra.s32 %s1112_s0, 7  ;;  %s1191_s29 = sand.u32 127, %s1112_s0  ;;  %v232_v3 = vlaneseq  ;;  %v1069_v52 = vmov 0.0  }
  0x3d   : > { %457 = vmatpush.msra.mxu2 %v388_v0  ;;  %477 = vmatpush.msra.mxu3 %v390_v1  ;;  %v389_v4 = vld [vmem:[%s1180_s12 + $0x30] sm:$0xff]  ;;  %s1194_s20 = sshll.u32 %s196_s24, 7  ;;  %v396_v9 = vld [vmem:[%s1180_s12 + $0x68] sm:$0xff]  ;;  %v398_v10 = vld [vmem:[%s1180_s12 + $0x78] sm:$0xff]  ;;  %p190_p12 = scmp.lt.s32.totalorder %s1112_s0, 5 }
  0x3e   : > { %s885_s30 = sadd.s32 128, %s1194_s20  ;;  %s889_s10 = sadd.s32 384, %s1194_s20  ;;  %v1203_v5 = vshrl.u32 %v232_v3, 7  ;;  %v395_v11 = vld [vmem:[%s1180_s12 + $0x60] sm:$0xff]  ;;  %v397_v13 = vld [vmem:[%s1180_s12 + $0x70] sm:$0xff]  ;;  %v1239_v17 = vand.u32 127, %v232_v3 }
  0x3f   : > { %458 = vmatpush.msra.mxu2 %v387_v2  ;;  %478 = vmatpush.msra.mxu3 %v389_v4  ;;  %s202_s13 = sadd.s32 %s885_s30, %s1191_s29  ;;  %s210_s14 = sadd.s32 %s889_s10, %s1191_s29  ;;  %v384_v22 = vld [vmem:[%s1180_s12 + $0x8] sm:$0xff]  ;;  %v386_v23 = vld [vmem:[%s1180_s12 + $0x18] sm:$0xff]  ;;  %v383_v24 = vld [vmem:[%s1180_s12] sm:$0xff] }
  0x40   : > { %s1200_s15 = sld [smem:[#allocation4 + %s202_s13]]  ;;  %s893_s16 = sadd.s32 640, %s1194_s20  ;;  %v234_v6 = vcvt.s32.f32 %v1203_v5  ;;  %417 = vmatpush.msra.mxu0 %v384_v22  ;;  %437 = vmatpush.msra.mxu1 %v386_v23  ;;  %v385_v25 = vld [vmem:[%s1180_s12 + $0x10] sm:$0xff]  ;;  %v392_v26 = vld [vmem:[%s1180_s12 + $0x48] sm:$0xff]  ;;  %v303_v27 = vcvt.s32.f32 %v1239_v17  ;;  %v394_v33 = vld [vmem:[%s1180_s12 + $0x58] sm:$0xff]  ;;  %v1273_v42 = vadd.s32 8, %v1203_v5 }
  0x41   : > { %s211_s21 = sld [smem:[#allocation4 + %s210_s14]]  ;;  %s218_s22 = sadd.s32 %s893_s16, %s1191_s29  ;;  %537 = vmatpush.msrb.mxu2 %v396_v9  ;;  %557 = vmatpush.msrb.mxu3 %v398_v10  ;;  %v391_v35 = vld [vmem:[%s1180_s12 + $0x40] sm:$0xff]  ;;  %v393_v36 = vld [vmem:[%s1180_s12 + $0x50] sm:$0xff] }
  0x42   : > { %s1206_s23 = sld [smem:[#allocation4 + %s218_s22]]  ;;  %s897_s26 = sadd.s32 896, %s1194_s20  ;;  %418 = vmatpush.msra.mxu0 %v383_v24  ;;  %438 = vmatpush.msra.mxu1 %v385_v25 }
  0x43   : > { %s226_s27 = sadd.s32 %s897_s26, %s1191_s29  ;;  %s887_s19 = sadd.s32 256, %s1194_s20  ;;  %538 = vmatpush.msrb.mxu2 %v395_v11  ;;  %558 = vmatpush.msrb.mxu3 %v397_v13 }
  0x44   : > { %s1211_s28 = sld [smem:[#allocation4 + %s226_s27]]  ;;  %s206_s5 = sadd.s32 %s887_s19, %s1191_s29  ;;  %497 = vmatpush.msrb.mxu0 %v392_v26  ;;  %517 = vmatpush.msrb.mxu1 %v394_v33 }
  0x45   : > { %s891_s6 = sadd.s32 512, %s1194_s20  ;;  %s895_s4 = sadd.s32 768, %s1194_s20 }
  0x46   : > { %v239_v7 = vstv %s1200_s15  ;;  %s214_s7 = sadd.s32 %s891_s6, %s1191_s29  ;;  %s222_s11 = sadd.s32 %s895_s4, %s1191_s29  ;;  %498 = vmatpush.msrb.mxu0 %v391_v35  ;;  %518 = vmatpush.msrb.mxu1 %v393_v36 }
  0x47   : > { %v237_v8 = vstv %s211_s21  ;;  %s1222_s8 = sld [smem:[#allocation4 + %s214_s7]]  ;;  %s899_s26 = sadd.s32 1024, %s1194_s20 }
  0x48   : > { %v238_v12 = vmul.f32 %v237_v8, %v234_v6  ;;  %p247_p1 = scmp.gt.f32.partialorder %s1206_s23, 0.0  ;;  %s1227_s24 = sld [smem:[#allocation4 + %s206_s5]] }
  0x49   : > { %p278_p4 = scmp.gt.f32.partialorder %s1206_s23, 1.0  ;;  %s1230_s30 = sld [smem:[#allocation4 + %s222_s11]] }
  0x4a   : > { %v240_v14 = vadd.f32 %v239_v7, %v238_v12  ;;  %s241_s10 = smul.f32 0.5, %s1211_s28  ;;  %s1234_s13 = sld [smem:[#allocation4 + %s1112_s0]] }
  0x4b   : > { %s248_s14 = scalar_select %p247_p1, 1, 0 }
  0x4c   : > { %v242_v15 = vstv %s241_s10  ;;  %s272_s15 = smul.f32 1.5, %s1211_s28  ;;  %s230_s27 = sadd.s32 %s899_s26, %s1191_s29 }
  0x4d   : > { %v243_v16 = vadd.f32 %v242_v15, %v240_v14  ;;  %s1237_s16 = scalar_select %p278_p4, 1, 0  ;;  %v249_v18 = vstv %s248_s14 }
  0x4e   : > { %v273_v19 = vstv %s272_s15  ;;  %p315_p5 = scmp.gt.f32.partialorder %s1222_s8, 0.0  ;;  %v305_v28 = vstv %s1227_s24  ;;  %vm1254_vm3 = vcmp.eq.s32.totalorder %v249_v18, 1  ;;  %p352_p11 = scmp.gt.f32.partialorder %s1222_s8, 1.0 }
  0x4f   : > { %vm244_vm0 = vcmp.ge.f32.partialorder %v243_v16, -1.0  ;;  %vm245_vm1 = vcmp.le.f32.partialorder %v243_v16, 16.0  ;;  %v253_v20 = vmax.f32 %v243_v16, 0.0  ;;  %v274_v21 = vadd.f32 %v273_v19, %v240_v14  ;;  %s309_s21 = smul.f32 0.5, %s1230_s30  ;;  %s231_s29 = sld [smem:[#allocation4 + %s230_s27]] }
  0x50   : > { %vm1250_vm2 = vmand %vm244_vm0, %vm245_vm1  ;;  %v280_v32 = vstv %s1237_s16  ;;  %s346_s22 = smul.f32 1.5, %s1230_s30  ;;  %v306_v37 = vmul.f32 %v305_v28, %v303_v27  ;;  %v307_v38 = vstv %s1234_s13  ;;  %s1431_s0 = smov (!%p190_p12, %s1112_s0), 5 }
  0x51   : > { %v254_v31 = vfloor.f32 %v253_v20  ;;  %vm275_vm4 = vcmp.ge.f32.partialorder %v274_v21, -1.0  ;;  %vm276_vm5 = vcmp.le.f32.partialorder %v274_v21, 16.0  ;;  %v284_v34 = vmax.f32 %v274_v21, 0.0  ;;  %s1266_s23 = scalar_select %p315_p5, 1, 0  ;;  %vm251_vm6 = vmand %vm1250_vm2, %vm1254_vm3 }
  0x52   : > { %v310_v40 = vstv %s309_s21  ;;  %v308_v43 = vadd.f32 %v307_v38, %v306_v37  ;;  %vm1278_vm8 = vmand %vm275_vm4, %vm276_vm5  ;;  %vm1282_vm9 = vcmp.eq.s32.totalorder %v280_v32, 1  ;;  %v347_v47 = vstv %s346_s22  ;;  %s1299_s12 = scalar_select %p352_p11, 1, 0 }
  0x53   : > { %v901_v39 = vcvt.f32.s32 %v254_v31  ;;  %v285_v41 = vfloor.f32 %v284_v34  ;;  %v252_v53 = vsel %vm251_vm6, 1.0, %v1069_v52  ;;  %v317_v56 = vstv %s1266_s23  ;;  %vm282_vm10 = vmand %vm1278_vm8, %vm1282_vm9  ;;  %s883_s20 = sshll.u32 %s1431_s0, 5 }
  0x54   : > { %v311_v51 = vadd.f32 %v310_v40, %v308_v43  ;;  %v348_v58 = vadd.f32 %v347_v47, %v308_v43  ;;  %vm1308_vm0 = vcmp.eq.s32.totalorder %v317_v56, 1  ;;  %v283_v4 = vsel %vm282_vm10, 1.0, %v1069_v52  ;;  %s194_s5 = scalar_lea.vmem %s1400_s3, %s883_s20 }
  0x55   : > { %vm256_vm7 = vcmp.ge.s32.totalorder %v901_v39, 15  ;;  %v258_v44 = vadd.s32 1, %v901_v39  ;;  %v903_v50 = vcvt.f32.s32 %v285_v41  ;;  %v354_v9 = vstv %s1299_s12 }
  0x56   : > { %v257_v48 = vsel %vm256_vm7, 15, %v901_v39  ;;  %v260_v49 = vsel %vm256_vm7, 15.0, %v253_v20  ;;  %vm312_vm12 = vcmp.ge.f32.partialorder %v311_v51, -1.0  ;;  %vm313_vm13 = vcmp.le.f32.partialorder %v311_v51, 16.0 }
  0x57   : > { %v259_v54 = vsel %vm256_vm7, 15, %v258_v44  ;;  %v261_v55 = vcvt.s32.f32 %v257_v48  ;;  %vm287_vm11 = vcmp.ge.s32.totalorder %v903_v50, 15  ;;  %v289_v57 = vadd.s32 1, %v903_v50  ;;  %vm1304_vm15 = vmand %vm312_vm12, %vm313_vm13 }
  0x58   : > { %v288_v60 = vsel %vm287_vm11, 15, %v903_v50  ;;  %v291_v61 = vsel %vm287_vm11, 15.0, %v284_v34  ;;  %vm268_vm14 = vcmp.eq.s32.totalorder %v1239_v17, %v259_v54  ;;  %v321_v1 = vmax.f32 %v311_v51, 0.0  ;;  %vm319_vm3 = vmand %vm1304_vm15, %vm1308_vm0 }
  0x59   : > { %v262_v59 = vsub.f32 %v260_v49, %v261_v55  ;;  %v292_v62 = vcvt.s32.f32 %v288_v60  ;;  %v290_v6 = vsel %vm287_vm11, 15, %v289_v57  ;;  %vm264_vm1 = vcmp.eq.s32.totalorder %v1239_v17, %v257_v48 }
  0x5a   : > { %v322_v8 = vfloor.f32 %v321_v1  ;;  %vm295_vm2 = vcmp.eq.s32.totalorder %v1239_v17, %v288_v60  ;;  %v358_v12 = vmax.f32 %v348_v58, 0.0  ;;  %vm299_vm4 = vcmp.eq.s32.totalorder %v1239_v17, %v290_v6 }
  0x5b   : > { %v263_v2 = vsub.f32 1.0, %v262_v59  ;;  %v269_v3 = vmul.f32 %v262_v59, %v252_v53  ;;  %v293_v7 = vsub.f32 %v291_v61, %v292_v62  ;;  %vm349_vm5 = vcmp.ge.f32.partialorder %v348_v58, -1.0 }
  0x5c   : > { %v905_v15 = vcvt.f32.s32 %v322_v8  ;;  %vm350_vm6 = vcmp.le.f32.partialorder %v348_v58, 16.0  ;;  %v359_v18 = vfloor.f32 %v358_v12  ;;  %v320_v21 = vsel %vm319_vm3, 1.0, %v1069_v52 }
  0x5d   : > { %v265_v10 = vmul.f32 %v263_v2, %v252_v53  ;;  %v270_v11 = vsel %vm268_vm14, %v269_v3, 0.0  ;;  %v294_v13 = vsub.f32 1.0, %v293_v7  ;;  %v300_v14 = vmul.f32 %v293_v7, %v283_v4  ;;  %vm1332_vm8 = vmand %vm349_vm5, %vm350_vm6 }
  0x5e   : > { %vm324_vm7 = vcmp.ge.s32.totalorder %v905_v15, 15  ;;  %v326_v23 = vadd.s32 1, %v905_v15  ;;  %v907_v25 = vcvt.f32.s32 %v359_v18  ;;  %vm1336_vm9 = vcmp.eq.s32.totalorder %v354_v9, 1 }
  0x5f   : > { %v266_v16 = vsel %vm264_vm1, %v265_v10, 0.0  ;;  %v296_v20 = vmul.f32 %v294_v13, %v283_v4  ;;  %v325_v22 = vsel %vm324_vm7, 15, %v905_v15  ;;  %v328_v24 = vsel %vm324_vm7, 15.0, %v321_v1  ;;  %vm356_vm13 = vmand %vm1332_vm8, %vm1336_vm9 }
  0x60   : > { %v271_v19 = vadd.f32 %v270_v11, %v266_v16  ;;  %v301_v27 = vsel %vm299_vm4, %v300_v14, 0.0  ;;  %v329_v28 = vcvt.s32.f32 %v325_v22  ;;  %v327_v32 = vsel %vm324_vm7, 15, %v326_v23 }
  0x61   : > { %v297_v26 = vsel %vm295_vm2, %v296_v20, 0.0  ;;  %vm361_vm10 = vcmp.ge.s32.totalorder %v907_v25, 15  ;;  %v363_v33 = vadd.s32 1, %v907_v25  ;;  %vm399_vm11 = vcmask 130048  }
  0x62   : > { %v298_v31 = vadd.f32 %v297_v26, %v271_v19  ;;  %v330_v34 = vsub.f32 %v328_v24, %v329_v28  ;;  %v362_v35 = vsel %vm361_vm10, 15, %v907_v25  ;;  %v365_v36 = vsel %vm361_vm10, 15.0, %v358_v12 }
  0x63   : > { %vm340_vm12 = vcmp.eq.s32.totalorder %v1273_v42, %v327_v32  ;;  %v366_v17 = vcvt.s32.f32 %v362_v35  ;;  %v364_v40 = vsel %vm361_vm10, 15, %v363_v33  ;;  %vm339_vm14 = vcmp.eq.s32.totalorder %v1203_v5, %v327_v32 }
  0x64   : > { %v302_v37 = vadd.f32 %v301_v27, %v298_v31  ;;  %v331_v38 = vsub.f32 1.0, %v330_v34  ;;  %v341_v39 = vmul.f32 %v330_v34, %v320_v21  ;;  %vm333_vm15 = vcmp.eq.s32.totalorder %v1273_v42, %v325_v22 }
  0x65   : > { %v367_v41 = vsub.f32 %v365_v36, %v366_v17  ;;  %vm332_vm0 = vcmp.eq.s32.totalorder %v1203_v5, %v325_v22  ;;  %v357_v45 = vsel %vm356_vm13, 1.0, %v1069_v52  ;;  %vm370_vm1 = vcmp.eq.s32.totalorder %v1273_v42, %v362_v35 }
  0x66   : > { %866 = vmatmul.msk.f32.vlgmr.msra.gmra.mxu2 %vm399_vm11, %v302_v37  ;;  %867 = vmatmul.msk.f32.vlgmr.msra.gmra.mxu3 %vm399_vm11, %v302_v37  ;;  %v334_v43 = vmul.f32 %v331_v38, %v320_v21  ;;  %v343_v44 = vsel %vm340_vm12, %v341_v39, 0.0  ;;  %v342_v46 = vsel %vm339_vm14, %v341_v39, 0.0  ;;  %vm377_vm2 = vcmp.eq.s32.totalorder %v1273_v42, %v364_v40 }
  0x67   : > { %864 = vmatmul.msk.f32.vlgmr.msra.gmra.mxu0 %vm399_vm11, %v302_v37  ;;  %865 = vmatmul.msk.f32.vlgmr.msra.gmra.mxu1 %vm399_vm11, %v302_v37  ;;  %v368_v47 = vsub.f32 1.0, %v367_v41  ;;  %v378_v48 = vmul.f32 %v367_v41, %v357_v45  ;;  %vm369_vm3 = vcmp.eq.s32.totalorder %v1203_v5, %v362_v35  ;;  %vm376_vm4 = vcmp.eq.s32.totalorder %v1203_v5, %v364_v40 }
  0x68   : > { %v336_v49 = vsel %vm333_vm15, %v334_v43, 0.0  ;;  %v335_v50 = vsel %vm332_vm0, %v334_v43, 0.0  ;;  %v747_v4 = vstv %s231_s29  ;;  %vm756_vm5 = vcmask 27648  }
  0x69   : > { %v345_v51 = vadd.f32 %v343_v44, %v336_v49  ;;  %v371_v53 = vmul.f32 %v368_v47, %v357_v45  ;;  %v344_v54 = vadd.f32 %v342_v46, %v335_v50  ;;  %v380_v56 = vsel %vm377_vm2, %v378_v48, 0.0 }
  0x6a   : > { %v379_v57 = vsel %vm376_vm4, %v378_v48, 0.0 }
  0x6b   : > { %v373_v55 = vsel %vm370_vm1, %v371_v53, 0.0  ;;  %v372_v52 = vsel %vm369_vm3, %v371_v53, 0.0 }
  0x6c   : > { %v375_v58 = vadd.f32 %v373_v55, %v345_v51  ;;  %v374_v59 = vadd.f32 %v372_v52, %v344_v54 }
  0x6e   : > { %870 = vmatmul.msk.f32.vlgmr.msrb.gmra.mxu2 %vm399_vm11, %v302_v37  ;;  %871 = vmatmul.msk.f32.vlgmr.msrb.gmra.mxu3 %vm399_vm11, %v302_v37  ;;  %v382_v5 = vadd.f32 %v380_v56, %v375_v58  ;;  %v381_v42 = vadd.f32 %v379_v57, %v374_v59 }
  0x6f   : > { %868 = vmatmul.msk.f32.vlgmr.msrb.gmra.mxu0 %vm399_vm11, %v302_v37  ;;  %869 = vmatmul.msk.f32.vlgmr.msrb.gmra.mxu1 %vm399_vm11, %v302_v37 }
  0x70   : > { %626 = vmatpush.msra.mxu2 %v382_v5  ;;  %649 = vmatpush.msra.mxu3 %v382_v5 }
  0x71   : > { %580 = vmatpush.msra.mxu0 %v382_v5  ;;  %603 = vmatpush.msra.mxu1 %v382_v5 }
  0x72   : > { %627 = vmatpush.msra.mxu2 %v381_v42  ;;  %650 = vmatpush.msra.mxu3 %v381_v42 }
  0x73   : > { %581 = vmatpush.msra.mxu0 %v381_v42  ;;  %604 = vmatpush.msra.mxu1 %v381_v42 }
  0x74   : > { %718 = vmatpush.msrb.mxu2 %v382_v5  ;;  %741 = vmatpush.msrb.mxu3 %v382_v5 }
  0x75   : > { %672 = vmatpush.msrb.mxu0 %v382_v5  ;;  %695 = vmatpush.msrb.mxu1 %v382_v5 }
  0x76   : > { %719 = vmatpush.msrb.mxu2 %v381_v42  ;;  %742 = vmatpush.msrb.mxu3 %v381_v42 }
  0x77   : > { %673 = vmatpush.msrb.mxu0 %v381_v42  ;;  %696 = vmatpush.msrb.mxu1 %v381_v42 }
  0xe4   : > { %v420_v60 = vpop.f32.mrf.mxu0  ;;  %v440_v61 = vpop.f32.mrf.mxu1 }
  0xe5   : > { %872 = vmatmul.msk.f32.vlgmr.msra.gmra.mxu0 %vm399_vm11, %v420_v60  ;;  %873 = vmatmul.msk.f32.vlgmr.msra.gmra.mxu1 %vm399_vm11, %v440_v61 }
  0xe9   : > { %v460_v62 = vpop.f32.mrf.mxu2  ;;  %v480_v63 = vpop.f32.mrf.mxu3 }
  0xea   : > { %874 = vmatmul.msk.f32.vlgmr.msra.gmra.mxu2 %vm399_vm11, %v460_v62  ;;  %875 = vmatmul.msk.f32.vlgmr.msra.gmra.mxu3 %vm399_vm11, %v480_v63 }
  0xec   : > { %v500_v0 = vpop.f32.mrf.mxu0  ;;  %v520_v1 = vpop.f32.mrf.mxu1 }
  0xed   : > { %876 = vmatmul.msk.f32.vlgmr.msrb.gmra.mxu0 %vm399_vm11, %v500_v0  ;;  %877 = vmatmul.msk.f32.vlgmr.msrb.gmra.mxu1 %vm399_vm11, %v520_v1 }
  0xf1   : > { %v540_v2 = vpop.f32.mrf.mxu2  ;;  %v560_v3 = vpop.f32.mrf.mxu3 }
  0xf2   : > { %878 = vmatmul.msk.f32.vlgmr.msrb.gmra.mxu2 %vm399_vm11, %v540_v2  ;;  %879 = vmatmul.msk.f32.vlgmr.msrb.gmra.mxu3 %vm399_vm11, %v560_v3 }
 0x162   : > { %v583_v6 = vpop.f32.mrf.mxu0  ;;  %v606_v7 = vpop.f32.mrf.mxu1 }
 0x163   : > { %v748_v8 = vmul.f32 %v747_v4, %v583_v6  ;;  %v749_v9 = vmul.f32 %v747_v4, %v606_v7 }
 0x165   : > { %757 = vst.msk [vmem:[%s194_s5] sm:$0xf] %vm756_vm5, %v748_v8 }
 0x166   : > { %758 = vst.msk [vmem:[%s194_s5 + $0x4] sm:$0xf] %vm756_vm5, %v749_v9 }
 0x16a   : > { %v675_v10 = vpop.f32.mrf.mxu0  ;;  %v698_v11 = vpop.f32.mrf.mxu1 }
 0x16b   : > { %v752_v12 = vmul.f32 %v747_v4, %v675_v10  ;;  %v753_v13 = vmul.f32 %v747_v4, %v698_v11 }
 0x16d   : > { %v629_v14 = vpop.f32.mrf.mxu2  ;;  %v652_v15 = vpop.f32.mrf.mxu3  ;;  %761 = vst.msk [vmem:[%s194_s5 + $0x10] sm:$0xf] %vm756_vm5, %v752_v12 }
 0x16e   : > { %v750_v16 = vmul.f32 %v747_v4, %v629_v14  ;;  %v751_v18 = vmul.f32 %v747_v4, %v652_v15  ;;  %762 = vst.msk [vmem:[%s194_s5 + $0x14] sm:$0xf] %vm756_vm5, %v753_v13 }
 0x170   : > { %759 = vst.msk [vmem:[%s194_s5 + $0x8] sm:$0xf] %vm756_vm5, %v750_v16 }
 0x171   : > { %760 = vst.msk [vmem:[%s194_s5 + $0xc] sm:$0xf] %vm756_vm5, %v751_v18 }
 0x175   : > { %v721_v19 = vpop.f32.mrf.mxu2  ;;  %v744_v20 = vpop.f32.mrf.mxu3 }
 0x176   : > { %v754_v21 = vmul.f32 %v747_v4, %v721_v19  ;;  %v755_v22 = vmul.f32 %v747_v4, %v744_v20 }
 0x178   : > { %763 = vst.msk [vmem:[%s194_s5 + $0x18] sm:$0xf] %vm756_vm5, %v754_v21 }
 0x179   : > { %764 = vst.msk [vmem:[%s194_s5 + $0x1c] sm:$0xf] %vm756_vm5, %v755_v22 }
 0x17a PF: > { %p22_p13 = scmp.ge.s32.totalorder %s1136_s25, 8   ;;  %s1420_s16 = smov %s1055_s17 }
 0x17b   : > { %s1421_s17 = smov %s1059_s18  ;;  %s1422_s18 = smov %s1150_s9 }
 0x17c   : > { %s1423_s19 = smov %s1136_s25  ;;  %24 = sbr.rel (!%p22_p13) target bundleno = 10 (0xa), region = 73 }
 0x181   :  { %786 = vsyncpa [#allocation5], 1 }
 0x182   :  { %788 = vsyncpa [#allocation5 + $0x1], 1 }
 0x183   :  { %789 = vsyncpa [#allocation6], 1 }
 0x184   :  { %791 = vsyncpa [#allocation6 + $0x1], 1 }

</bundles_post_ra>
